<compile_context>
chip_gen: v5e
topology: v5e:2x2
jax: 0.10.0
libtpu: 0.0.40
codegen_flags: <defaults>
</compile_context>

<pallas_src>
import functools

import jax
import jax.numpy as jnp
from jax import lax
from jax.experimental import pallas as pl
from jax.experimental.pallas import tpu as pltpu


def _round_up(a: int, b: int) -> int:
    return -(-a // b) * b


def _vmem_budget_bytes() -> int:
    """~75% of this generation's per-core VMEM; conservative v7x fallback."""
    try:
        cap = int(pltpu.get_tpu_info().vmem_capacity_bytes)
    except Exception:
        cap = 64 * 1024 * 1024  # assume v7x (the binding constraint)
    return max(int(0.75 * cap), 32 * 1024 * 1024)


def _make_reducer_kernel(n_rows, tm, m_total, mask_rows, use_acc_scratch):
    def kernel(idx_ref, x_ref, o_ref, *scratch):
        # grid = (D tiles ["parallel"], M tiles ["arbitrary" reduction])
        k = pl.program_id(1)
        acc_ref = scratch[0] if use_acc_scratch else o_ref

        @pl.when(k == 0)
        def _init():
            acc_ref[...] = jnp.zeros_like(acc_ref)

        x = x_ref[...]                                        # (tm, tD)
        if mask_rows:
            # The last M tile is ragged: zero the unspecified tail rows so
            # stale VMEM (possibly NaN/Inf) cannot reach the MXU.
            rem = m_total - k * tm                            # dynamic scalar
            valid = lax.broadcasted_iota(jnp.int32, (tm, 1), 0) < rem
            x = jnp.where(valid, x, jnp.zeros_like(x))

        idx_row = idx_ref[...].reshape(1, tm)                 # lane-dense idx
        row_id = lax.broadcasted_iota(jnp.int32, (n_rows, 1), 0)
        # onehot[j, i] = (idx[i] == j); 0/1 is exact in bf16 so the MXU runs
        # at its native rate; accumulation stays f32 via preferred_element_type.
        onehot = (idx_row == row_id).astype(x.dtype)          # (n_rows, tm)

        # Resident f32 accumulate (in-place MRB accumulate on v7x).
        acc_ref[...] += jnp.dot(onehot, x,
                                preferred_element_type=jnp.float32)

        if use_acc_scratch:
            @pl.when(k == pl.num_programs(1) - 1)
            def _fin():
                o_ref[...] = acc_ref[...].astype(o_ref.dtype)

    return kernel


@functools.partial(jax.jit, static_argnames=("n", "tm", "td_max"))
def reducer_forward(idx, x, *, n, tm=None, td_max=None):
    """Equivalent of easier.Reducer(idx, n, reduce='sum').forward(x)."""
    M = x.shape[0]
    sub = x.shape[1:]
    D = 1
    for s in sub:
        D *= int(s)
    dtype = x.dtype
    elsize = jnp.dtype(dtype).itemsize
    n_sub = _round_up(n, 8)

    budget = _vmem_budget_bytes()
    use_acc_scratch = dtype != jnp.float32

    # ---- D (lane) axis tiling ---------------------------------------------
    if td_max is not None:
        assert td_max % 128 == 0, "td_max must be a multiple of 128"
        td_cap = int(td_max)
    else:
        td_cap = 1024 if budget > (64 << 20) else 512   # v5e/v6e vs v7x

    if D <= min(256, td_cap):
        tD = max(D, 1)                         # single full-width block
    else:
        half = -(-D // 2)                      # >=2 parallel blocks (v7x 2 TC)
        tD = min(td_cap, max(256, _round_up(half, 128)))
        tD = min(tD, _round_up(D, 128))

    def _fixed(td):  # resident output block (+ f32 scratch), conservative x2
        return 2 * n_sub * td * elsize + (n_sub * td * 4 if use_acc_scratch else 0)

    # Last-resort: shrink tD only if the n-dependent resident cost is too big.
    while tD > 128 and tD % 128 == 0 and _fixed(tD) > budget // 2:
        tD = max(128, _round_up(tD // 2, 128))
    num_d = -(-D // tD)

    # ---- M (MXU contraction) axis tiling: shrink tm before tD --------------
    tm_cap = int(tm) if tm is not None else (2048 if dtype == jnp.bfloat16 else 1024)
    tm_cap = max(128, min(_round_up(tm_cap, 128), _round_up(M, 128)))

    def _per_tm(t):
        return (2 * t * tD * elsize            # x tile, double-buffered
                + 2 * 8 * t * 4                # idx tile (sublane-padded), x2
                + n_sub * t * elsize           # one-hot temporary
                + t * tD * elsize              # masked-x temporary
                + 4096)                        # iotas / misc

    tm_ = tm_cap
    while tm_ > 128 and _fixed(tD) + _per_tm(tm_) > budget:
        tm_ -= 128
    tm_ = max(128, tm_)

    num_m = -(-M // tm_)
    M_pad = num_m * tm_
    mask_rows = (M % tm_) != 0

    # ---- inputs: only the tiny idx vector is padded (-1 == "no row"); the
    # big x tensor is consumed in place (no HBM copy). -----------------------
    idx1 = idx.reshape(M).astype(jnp.int32)
    if M_pad != M:
        idx1 = jnp.pad(idx1, (0, M_pad - M), constant_values=-1)
    idx3 = idx1.reshape(num_m, 1, tm_)         # lane-dense idx tiles
    x2 = x.reshape(M, D)

    scratch_shapes = []
    if use_acc_scratch:
        scratch_shapes.append(pltpu.VMEM((n, tD), jnp.float32))

    out2 = pl.pallas_call(
        _make_reducer_kernel(n, tm_, M, mask_rows, use_acc_scratch),
        out_shape=jax.ShapeDtypeStruct((n, D), dtype),
        grid_spec=pltpu.PrefetchScalarGridSpec(
            num_scalar_prefetch=0,
            grid=(num_d, num_m),
            in_specs=[
                pl.BlockSpec((1, 1, tm_), lambda d, k: (k, 0, 0)),   # idx tile
                pl.BlockSpec((tm_, tD), lambda d, k: (k, d)),        # x tile
            ],
            out_specs=pl.BlockSpec((n, tD), lambda d, k: (0, d)),
            scratch_shapes=scratch_shapes,
        ),
        compiler_params=pltpu.CompilerParams(
            dimension_semantics=("parallel", "arbitrary"),
            vmem_limit_bytes=int(budget),
        ),
    )(idx3, x2)

    return out2.reshape((n,) + sub)


if __name__ == "__main__":
    key = jax.random.PRNGKey(0)
    k_idx, k_x = jax.random.split(key)

    # --- f32 path: resident-output accumulation, ragged single M tile -------
    M, n = 16, 8
    sub = (4, 8)                                 # D = 32 (no 128 padding)
    idx = jax.random.randint(k_idx, (M,), 0, n, dtype=jnp.int32)
    x = jax.random.normal(k_x, (M,) + sub, dtype=jnp.float32)

    out = reducer_forward(idx, x, n=n)
    out = jax.block_until_ready(out)
    ref = jnp.zeros((n,) + sub, jnp.float32).at[idx].add(x)
    assert out.shape == (n,) + sub
    assert jnp.allclose(out, ref, atol=1e-5, rtol=1e-5), "f32 mismatch"

    # --- bf16 path: bf16 MXU operands, f32 scratch accumulator, final cast --
    x_bf16 = x.astype(jnp.bfloat16)
    out_bf = reducer_forward(idx, x_bf16, n=n)
    out_bf = jax.block_until_ready(out_bf)
    ref_bf = (jnp.zeros((n,) + sub, jnp.float32)
              .at[idx].add(x_bf16.astype(jnp.float32))).astype(jnp.bfloat16)
    assert out_bf.dtype == jnp.bfloat16
    assert jnp.allclose(out_bf.astype(jnp.float32),
                        ref_bf.astype(jnp.float32),
                        atol=2e-2, rtol=2e-2), "bf16 mismatch"

    # --- D-blocked path: D > tD -> multiple "parallel" feature tiles --------
    k_idx2, k_x2 = jax.random.split(jax.random.PRNGKey(1))
    M2, n2, D2 = 24, 16, 256
    idx_b = jax.random.randint(k_idx2, (M2,), 0, n2, dtype=jnp.int32)
    x_b = jax.random.normal(k_x2, (M2, D2), dtype=jnp.float32)
    out_b = reducer_forward(idx_b, x_b, n=n2, td_max=128)
    out_b = jax.block_until_ready(out_b)
    ref_b = jnp.zeros((n2, D2), jnp.float32).at[idx_b].add(x_b)
    assert jnp.allclose(out_b, ref_b, atol=1e-5, rtol=1e-5), "D-block mismatch"

    # --- multi-tile M reduction with a ragged last tile (in-kernel mask) ----
    k_idx3, k_x3 = jax.random.split(jax.random.PRNGKey(2))
    M3, n3, D3 = 300, 16, 64
    idx_c = jax.random.randint(k_idx3, (M3,), 0, n3, dtype=jnp.int32)
    x_c = jax.random.normal(k_x3, (M3, D3), dtype=jnp.bfloat16)
    out_c = reducer_forward(idx_c, x_c, n=n3, tm=128)     # num_m = 3, tail 44
    out_c = jax.block_until_ready(out_c)
    ref_c = (jnp.zeros((n3, D3), jnp.float32)
             .at[idx_c].add(x_c.astype(jnp.float32))).astype(jnp.bfloat16)
    assert jnp.allclose(out_c.astype(jnp.float32),
                        ref_c.astype(jnp.float32),
                        atol=5e-2, rtol=5e-2), "ragged multi-tile mismatch"

    print("KERNEL_OK")
</pallas_src>

<mosaic_0001>
module attributes {stable_mosaic.version = 11 : i64} {
  func.func @kernel(%arg0: i32, %arg1: i32, %arg2: memref<1x1x128xi32, #tpu.memory_space<vmem>>, %arg3: memref<128x32xf32, #tpu.memory_space<vmem>>, %arg4: memref<8x32xf32, #tpu.memory_space<vmem>>) attributes {dimension_semantics = [#tpu.dimension_semantics<parallel>, #tpu.dimension_semantics<arbitrary>], iteration_bounds = array<i64: 1, 1>, scalar_prefetch = 0 : i64, scratch_operands = 0 : i64, tpu.core_type = #tpu.core_type<tc>, window_params = [{transform_indices = @transform_0, window_bounds = array<i64: 1, 1, 128>}, {transform_indices = @transform_1, window_bounds = array<i64: 128, 32>}, {transform_indices = @transform_2, window_bounds = array<i64: 8, 32>}]} {
    %c0_i32 = arith.constant 0 : i32
    %0 = arith.cmpi eq, %arg1, %c0_i32 : i32
    %1 = arith.extui %0 : i1 to i32
    %c0_i32_0 = arith.constant 0 : i32
    %2 = arith.cmpi ne, %1, %c0_i32_0 : i32
    scf.if %2 {
      %cst_10 = arith.constant 0.000000e+00 : f32
      %25 = vector.broadcast %cst_10 : f32 to vector<8x32xf32>
      %c0_11 = arith.constant 0 : index
      %c0_12 = arith.constant 0 : index
      %26 = vector.load %arg4[%c0_11, %c0_12] : memref<8x32xf32, #tpu.memory_space<vmem>>, vector<8x32xf32>
      tpu.vector_store %arg4[%c0_11, %c0_12], %25 {strides = array<i32>} : memref<8x32xf32, #tpu.memory_space<vmem>>, vector<8x32xf32>,
    } else {
    }
    %c0 = arith.constant 0 : index
    %c0_1 = arith.constant 0 : index
    %3 = vector.load %arg3[%c0, %c0_1] : memref<128x32xf32, #tpu.memory_space<vmem>>, vector<128x32xf32>
    %c128_i32 = arith.constant 128 : i32
    %4 = arith.muli %arg1, %c128_i32 : i32
    %c16_i32 = arith.constant 16 : i32
    %5 = arith.subi %c16_i32, %4 : i32
    %6 = tpu.iota {dimensions = array<i32: 0>} : vector<128x1xi32>
    %7 = vector.broadcast %5 : i32 to vector<128x1xi32>
    %8 = arith.cmpi slt, %6, %7 : vector<128x1xi32>
    %cst = arith.constant 0.000000e+00 : f32
    %9 = vector.broadcast %cst : f32 to vector<128x32xf32>
    %10 = vector.shape_cast %8 : vector<128x1xi1> to vector<128x1xi1>
    %11 = vector.broadcast %10 : vector<128x1xi1> to vector<128x32xi1>
    %12 = arith.select %11, %3, %9 : vector<128x32xi1>, vector<128x32xf32>
    %c0_2 = arith.constant 0 : index
    %c0_3 = arith.constant 0 : index
    %c0_4 = arith.constant 0 : index
    %13 = vector.load %arg2[%c0_2, %c0_3, %c0_4] : memref<1x1x128xi32, #tpu.memory_space<vmem>>, vector<1x1x128xi32>
    %14 = vector.shape_cast %13 : vector<1x1x128xi32> to vector<1x128xi32>
    %15 = tpu.iota {dimensions = array<i32: 0>} : vector<8x1xi32>
    %16 = vector.broadcast %14 : vector<1x128xi32> to vector<8x128xi32>
    %17 = vector.broadcast %15 : vector<8x1xi32> to vector<8x128xi32>
    %18 = arith.cmpi eq, %16, %17 : vector<8x128xi32>
    %19 = arith.extui %18 : vector<8x128xi1> to vector<8x128xi32>
    %20 = arith.sitofp %19 : vector<8x128xi32> to vector<8x128xf32>
    %c0_5 = arith.constant 0 : index
    %c0_6 = arith.constant 0 : index
    %21 = vector.load %arg4[%c0_5, %c0_6] : memref<8x32xf32, #tpu.memory_space<vmem>>, vector<8x32xf32>
    %cst_7 = arith.constant dense<0.000000e+00> : vector<8x32xf32>
    %22 = tpu.matmul %20, %12, %cst_7 {dimension_numbers = #tpu.dot_dimension_numbers<[1], [0], [0], [1], [0, 0, 1, 1], [], []>} : vector<8x128xf32>, vector<128x32xf32>, vector<8x32xf32> -> vector<8x32xf32>
    %23 = arith.addf %21, %22 : vector<8x32xf32>
    %c0_8 = arith.constant 0 : index
    %c0_9 = arith.constant 0 : index
    %24 = vector.load %arg4[%c0_8, %c0_9] : memref<8x32xf32, #tpu.memory_space<vmem>>, vector<8x32xf32>
    tpu.vector_store %arg4[%c0_8, %c0_9], %23 {strides = array<i32>} : memref<8x32xf32, #tpu.memory_space<vmem>>, vector<8x32xf32>,
    return
  }
  func.func @transform_0(%arg0: i32, %arg1: i32) -> (i32, i32, i32) {
    %c0_i32 = arith.constant 0 : i32
    %c0_i32_0 = arith.constant 0 : i32
    %c0_i32_1 = arith.constant 0 : i32
    return %arg1, %c0_i32, %c0_i32_0 : i32, i32, i32
  }
  func.func @transform_1(%arg0: i32, %arg1: i32) -> (i32, i32) {
    %c0_i32 = arith.constant 0 : i32
    return %arg1, %arg0 : i32, i32
  }
  func.func @transform_2(%arg0: i32, %arg1: i32) -> (i32, i32) {
    %c0_i32 = arith.constant 0 : i32
    %c0_i32_0 = arith.constant 0 : i32
    return %c0_i32, %arg0 : i32, i32
  }
}

</mosaic_0001>

<bundles_post_ra>
// kernel: reducer_forward.1
= control target key start
LH: loop header
LB: loop body
LE: loop exit
PB: predicated region body
PF: predicated region fallthrough
CT: control target
= control target key end

     0   :  { %v35_v0 = vlaneseq  ;;  %vm15_vm0 = vcmask 261120   ;;  %v155_v3 = vmov 0.0   ;;  %v156_v6 = vmov 1.0   ;;  %s190_s1 = inlined_call_operand.vmem [shape: f32[16,32], index: 1, kind: input, shape index: {}]   ;;  %s191_s0 = inlined_call_operand.vmem [shape: s32[1,1,128], index: 0, kind: input, shape index: {}]   ;;  %s192_s2 = inlined_call_operand.vmem [shape: f32[8,32], index: 2, kind: output, shape index: {}]  }
   0x1   :  { %v18_v1 = vld [vmem:[%s190_s1 + $0x8] sm:$0xff]  ;;  %v17_v2 = vld [vmem:[%s190_s1] sm:$0xff]  ;;  %16 = vst.msk [vmem:[%s192_s2] sm:$0xff] %vm15_vm0, %v155_v3 }
   0x2   :  { %137 = vmatpush.msra.mxu0 %v18_v1  ;;  %v36_v4 = vshrl.u32 %v35_v0, 7  ;;  %v154_v5 = vld [vmem:[%s191_s0] ss:$0 sm:$0xff] }
   0x4   :  { %138 = vmatpush.msra.mxu0 %v17_v2  ;;  %vm119_vm1 = vcmp.eq.s32.totalorder %v154_v5, %v36_v4 }
   0x5   :  { %151 = vmatmul.msk.f32.vlgmr.msra.gmra.mxu0 %vm119_vm1, %v156_v6 }
   0x8   :  { %v122_v7 = vld [vmem:[%s192_s2] sm:$0xff] }
  0x82   :  { %v140_v8 = vpop.f32.mrf.mxu0 }
  0x83   :  { %v143_v9 = vadd.f32 %v140_v8, %v122_v7 }
  0x85   :  { %145 = vst.msk [vmem:[%s192_s2] sm:$0xff] %vm15_vm0, %v143_v9 }

</bundles_post_ra>
